<compile_context>
chip_gen: v5e
topology: v5e:2x2
jax: 0.10.0
libtpu: 0.0.40
codegen_flags: <defaults>
</compile_context>

<pallas_src>
import math
import functools

import jax
import jax.numpy as jnp
from jax.experimental import pallas as pl
from jax.experimental.pallas import tpu as pltpu


# ----------------------------------------------------------------------------
# PE buffer construction (mirrors nn.Module.__init__)
# ----------------------------------------------------------------------------
def make_pe_table(d_model: int, max_len: int = 5000, dtype=jnp.float32):
    position = jnp.arange(max_len, dtype=jnp.float32)[:, None]           # (max_len, 1)
    div_term = jnp.exp(
        jnp.arange(0, d_model, 2, dtype=jnp.float32) * (-(math.log(10000.0) / d_model))
    )                                                                    # (d_model//2,)
    angles = position * div_term                                         # (max_len, d_model//2)
    pe = jnp.zeros((max_len, d_model), dtype=jnp.float32)
    pe = pe.at[:, 0::2].set(jnp.sin(angles))
    pe = pe.at[:, 1::2].set(jnp.cos(angles))
    return pe[:, None, :].astype(dtype)                                  # (max_len, 1, d_model)


# ----------------------------------------------------------------------------
# Kernels — blocks are 2-D lane-dense slabs: x/out (TB, TS*D), pe (TB, TS*D)
# ----------------------------------------------------------------------------
def _pe_add_kernel(x_ref, pe_ref, o_ref):
    y = x_ref[...].astype(jnp.float32) + pe_ref[...].astype(jnp.float32)
    o_ref[...] = y.astype(o_ref.dtype)


def _pe_add_dropout_kernel(x_ref, pe_ref, bits_ref, o_ref, *, threshold: int, scale: float):
    y = x_ref[...].astype(jnp.float32) + pe_ref[...].astype(jnp.float32)
    keep = bits_ref[...] >= jnp.uint32(threshold)          # integer-threshold Bernoulli
    y = jnp.where(keep, y * jnp.float32(scale), jnp.float32(0.0))
    o_ref[...] = y.astype(o_ref.dtype)


# ----------------------------------------------------------------------------
# Tiling helpers
# ----------------------------------------------------------------------------
_TARGET_BLOCK_BYTES = 2 * 1024 * 1024  # per-buffer block; ~8 live blocks stay well under VMEM
                                       # (also fits v7x's 64 MiB VMEM with multi-buffering)


def _choose_block(n: int, quantum: int, cap: int) -> int:
    """Largest multiple of `quantum` that divides n and is <= cap; fall back to
    quantum (if it divides n) or the full dim (always legal per (8,128) rule)."""
    best = None
    d = quantum
    limit = min(cap, n)
    while d <= limit:
        if n % d == 0:
            best = d
        d += quantum
    if best is None:
        best = quantum if (n % quantum == 0) else n
    return best


def _choose_tiles(OB: int, S: int, D: int, itemsize: int):
    if OB * S * D * itemsize <= _TARGET_BLOCK_BYTES:
        return OB, S                                  # single block, grid (1, 1)
    # seq tile: TS*D must be a multiple of 128 lanes (or TS == S)
    q = 128 // math.gcd(D, 128)
    cap_ts = max(1, _TARGET_BLOCK_BYTES // (8 * D * itemsize))
    TS = _choose_block(S, q, cap_ts)
    # batch tile: multiple of 8 sublanes (or TB == OB)
    cap_tb = max(1, _TARGET_BLOCK_BYTES // (TS * D * itemsize))
    TB = _choose_block(OB, 8, cap_tb)
    return TB, TS


# ----------------------------------------------------------------------------
# Forward
# ----------------------------------------------------------------------------
def positional_encoding_forward(x, pe, *, p: float = 0.1, training: bool = False,
                                rng_key=None):
    """x: (B, S, D); pe: (max_len, 1, D). Returns dropout(x + pe[:S]) like the torch module."""
    B, S, D = x.shape
    pe_slice = pe[:S]                                   # (S, 1, D) == self.pe[:X.size(1), :]

    # Exact PyTorch/NumPy broadcast of (B, S, D) + (S, 1, D); raises if incompatible.
    OB, _, _ = jnp.broadcast_shapes(x.shape, pe_slice.shape)
    out_dtype = jnp.result_type(x.dtype, pe.dtype)

    pe_row = pe_slice[:, 0, :]                          # (S, D): per-output-row PE
    if pe_row.shape[0] != OB:                           # only when S == 1
        pe_row = jnp.broadcast_to(pe_row, (OB, D))
    if B != OB:                                         # only when B == 1
        x = jnp.broadcast_to(x, (OB, S, D))

    TB, TS = _choose_tiles(OB, S, D, 4)
    grid = (OB // TB, S // TS)

    # Flatten to lane-dense 2-D: last dim TS*D is a multiple of 128 (or the full row).
    x2 = x.reshape(OB, S * D)
    # One seq-tile worth of PE per batch row; constant index_map along the seq
    # axis keeps it resident in VMEM (single DMA per batch tile).
    pe_tiled = jnp.tile(pe_row.astype(out_dtype), (1, TS))          # (OB, TS*D)

    x_spec = pl.BlockSpec((TB, TS * D), lambda bi, si: (bi, si))
    pe_spec = pl.BlockSpec((TB, TS * D), lambda bi, si: (bi, 0))
    out_spec = pl.BlockSpec((TB, TS * D), lambda bi, si: (bi, si))

    compiler_params = pltpu.CompilerParams(
        dimension_semantics=("parallel", "parallel"),
        vmem_limit_bytes=48 * 1024 * 1024,
    )
    out_shape = jax.ShapeDtypeStruct((OB, S * D), out_dtype)

    if training and p > 0.0:
        if rng_key is None:
            rng_key = jax.random.PRNGKey(0)
        # TODO(synk): torch.nn.Dropout's RNG stream cannot be bit-matched; we use
        # host-generated uint32 bits with an integer keep-threshold (identical
        # Bernoulli-keep / 1/(1-p) scaling semantics). The on-chip PRNG
        # (pltpu.prng_seed / prng_random_bits) would avoid this extra HBM read
        # but has no CPU/interpret lowering.
        bits = jax.random.bits(rng_key, (OB, S * D), dtype=jnp.uint32)
        threshold = min(int(round(float(p) * 2.0 ** 32)), 2 ** 32 - 1)
        kernel = functools.partial(
            _pe_add_dropout_kernel,
            threshold=threshold,
            scale=1.0 / (1.0 - float(p)),
        )
        out2 = pl.pallas_call(
            kernel,
            out_shape=out_shape,
            grid=grid,
            in_specs=[x_spec, pe_spec, x_spec],
            out_specs=out_spec,
            compiler_params=compiler_params,
        )(x2, pe_tiled, bits)
    else:
        out2 = pl.pallas_call(
            _pe_add_kernel,
            out_shape=out_shape,
            grid=grid,
            in_specs=[x_spec, pe_spec],
            out_specs=out_spec,
            compiler_params=compiler_params,
        )(x2, pe_tiled)

    return out2.reshape(OB, S, D)


# ----------------------------------------------------------------------------
# Demo / self-check
# ----------------------------------------------------------------------------
if __name__ == "__main__":
    D_MODEL = 32
    SEQ = 8
    BATCH = 8       # batch == seq_len: required by the literal (B,S,D)+(S,1,D) broadcast
    P_DROP = 0.1

    key = jax.random.PRNGKey(0)
    kx, kdrop = jax.random.split(key)
    x = jax.random.normal(kx, (BATCH, SEQ, D_MODEL), dtype=jnp.float32)
    pe = make_pe_table(D_MODEL, max_len=5000)            # module default max_len

    # --- eval mode: dropout is identity -> deterministic check vs pure-JAX ref
    out = jax.block_until_ready(
        positional_encoding_forward(x, pe, p=P_DROP, training=False))
    ref = x + pe[:SEQ]                                   # same broadcast as torch
    assert out.shape == ref.shape and out.dtype == ref.dtype
    assert jnp.allclose(out, ref, atol=1e-6, rtol=1e-6)

    # --- train mode: dropout mask derives from deterministic host bits -> exact check
    out_tr = jax.block_until_ready(
        positional_encoding_forward(x, pe, p=P_DROP, training=True, rng_key=kdrop))
    bits = jax.random.bits(kdrop, (BATCH, SEQ * D_MODEL), dtype=jnp.uint32)
    thr = min(int(round(P_DROP * 2.0 ** 32)), 2 ** 32 - 1)
    keep = (bits >= jnp.uint32(thr)).reshape(BATCH, SEQ, D_MODEL)
    ref_tr = jnp.where(keep, ref * jnp.float32(1.0 / (1.0 - P_DROP)), 0.0)
    assert out_tr.shape == ref.shape
    assert jnp.allclose(out_tr, ref_tr, atol=1e-5, rtol=1e-5)

    print("KERNEL_OK")
</pallas_src>

<mosaic_0001>
module attributes {stable_mosaic.version = 11 : i64} {
  func.func @_pe_add_kernel(%arg0: i32, %arg1: i32, %arg2: memref<8x256xf32, #tpu.memory_space<vmem>>, %arg3: memref<8x256xf32, #tpu.memory_space<vmem>>, %arg4: memref<8x256xf32, #tpu.memory_space<vmem>>) attributes {dimension_semantics = [#tpu.dimension_semantics<parallel>, #tpu.dimension_semantics<parallel>], iteration_bounds = array<i64: 1, 1>, scalar_prefetch = 0 : i64, scratch_operands = 0 : i64, tpu.core_type = #tpu.core_type<tc>, window_params = [{transform_indices = @transform_0, window_bounds = array<i64: 8, 256>}, {transform_indices = @transform_1, window_bounds = array<i64: 8, 256>}, {transform_indices = @transform_2, window_bounds = array<i64: 8, 256>}]} {
    %c0 = arith.constant 0 : index
    %c0_0 = arith.constant 0 : index
    %0 = vector.load %arg2[%c0, %c0_0] : memref<8x256xf32, #tpu.memory_space<vmem>>, vector<8x256xf32>
    %c0_1 = arith.constant 0 : index
    %c0_2 = arith.constant 0 : index
    %1 = vector.load %arg3[%c0_1, %c0_2] : memref<8x256xf32, #tpu.memory_space<vmem>>, vector<8x256xf32>
    %2 = arith.addf %0, %1 : vector<8x256xf32>
    %c0_3 = arith.constant 0 : index
    %c0_4 = arith.constant 0 : index
    %3 = vector.load %arg4[%c0_3, %c0_4] : memref<8x256xf32, #tpu.memory_space<vmem>>, vector<8x256xf32>
    tpu.vector_store %arg4[%c0_3, %c0_4], %2 {strides = array<i32>} : memref<8x256xf32, #tpu.memory_space<vmem>>, vector<8x256xf32>,
    return
  }
  func.func @transform_0(%arg0: i32, %arg1: i32) -> (i32, i32) {
    %c0_i32 = arith.constant 0 : i32
    return %arg0, %arg1 : i32, i32
  }
  func.func @transform_1(%arg0: i32, %arg1: i32) -> (i32, i32) {
    %c0_i32 = arith.constant 0 : i32
    %c0_i32_0 = arith.constant 0 : i32
    return %arg0, %c0_i32 : i32, i32
  }
  func.func @transform_2(%arg0: i32, %arg1: i32) -> (i32, i32) {
    %c0_i32 = arith.constant 0 : i32
    return %arg0, %arg1 : i32, i32
  }
}

</mosaic_0001>

<bundles_post_ra>
// kernel: tpu_custom_call.1
= control target key start
LH: loop header
LB: loop body
LE: loop exit
PB: predicated region body
PF: predicated region fallthrough
CT: control target
= control target key end

     0   :  { %7 = vsyncpa [#allocation3], 0  ;;  %s174_s0 = inlined_call_operand.hbm [shape: f32[8,256], index: 0, kind: input, shape index: {}]   ;;  %s175_s1 = inlined_call_operand.hbm [shape: f32[8,256], index: 1, kind: input, shape index: {}]   ;;  %s176_s2 = inlined_call_operand.hbm [shape: f32[8,256], index: 2, kind: output, shape index: {}]  }
   0x1   :  { %8 = vsyncpa [#allocation6], 0 }
   0x2   :  { %9 = vsyncpa [#allocation4], 0  ;;  %s15_s11 = sshll.u32 %s174_s0, 4  ;;  %s147_s12 = smov [#allocation2]   ;;  %s16_s11 = int_to_ptr.hbm [resolvable:$true] %s15_s11 }
   0x3   :  { %s17_s13 = sshll.u32 %s147_s12, 4  ;;  %s26_s16 = sshll.u32 %s175_s1, 4  ;;  %s18_s13 = int_to_ptr.vmem [resolvable:$true] %s17_s13  ;;  %s27_s16 = int_to_ptr.hbm [resolvable:$true] %s26_s16 }
   0x4   :  { %20 = dma.hbm_to_vmem [thread:$0]  %s16_s11, 256, %s18_s13, [#allocation3]  }
   0x5   :  { %s148_s17 = smov [#allocation5]  }
   0x6   :  { %s28_s18 = sshll.u32 %s148_s17, 4  ;;  %s29_s18 = int_to_ptr.vmem [resolvable:$true] %s28_s18 }
   0x7   :  { %31 = dma.hbm_to_vmem [thread:$0]  %s27_s16, 256, %s29_s18, [#allocation6]  }
   0x8   :  { %141 = dma.done.wait [#allocation3], 256  }
   0x9   :  { %142 = vsyncadd [#allocation3], 4294967040 }
   0xa   :  { %143 = dma.done.wait [#allocation6], 256  }
   0xb   :  { %144 = vsyncadd [#allocation6], 4294967040  ;;  %s149_s19 = smov [#allocation7]   ;;  %s55_s22 = sshll.u32 %s176_s2, 4  ;;  %v40_v0 = vld [vmem:[#allocation2] sm:$0xff]  ;;  %v42_v1 = vld [vmem:[#allocation5] sm:$0xff]  ;;  %s56_s22 = int_to_ptr.hbm [resolvable:$true] %s55_s22 }
   0xc   :  { %s53_s0 = sshll.u32 %s149_s19, 4  ;;  %v41_v2 = vld [vmem:[#allocation2 + $0x8] sm:$0xff]  ;;  %v44_v3 = vadd.f32 %v42_v1, %v40_v0  ;;  %v43_v4 = vld [vmem:[#allocation5 + $0x8] sm:$0xff]  ;;  %s54_s0 = int_to_ptr.vmem [resolvable:$true] %s53_s0 }
   0xd   :  { %v45_v5 = vadd.f32 %v43_v4, %v41_v2 }
   0xe   :  { %46 = vst [vmem:[#allocation7] sm:$0xff] %v44_v3 }
   0xf   :  { %47 = vst [vmem:[#allocation7 + $0x8] sm:$0xff] %v45_v5 }
  0x10   :  { %58 = dma.vmem_to_hbm [thread:$0]  %s54_s0, 256, %s56_s22, [#allocation4]  }
  0x11   :  { %145 = dma.done.wait [#allocation4], 256  }
  0x12   :  { %146 = vsyncadd [#allocation4], 4294967040 }
  0x13   :  { %63 = vsyncpa [#allocation3], 1 }
  0x14   :  { %64 = vsyncpa [#allocation6], 1 }
  0x15   :  { %65 = vsyncpa [#allocation4], 1 }

</bundles_post_ra>
